<compile_context>
chip_gen: v5e
topology: v5e:2x2
jax: 0.10.0
libtpu: 0.0.40
codegen_flags: <defaults>
</compile_context>

<pallas_src>
import functools

import jax
import jax.numpy as jnp
from jax import lax
from jax.experimental import pallas as pl
from jax.experimental.pallas import tpu as pltpu

F32 = jnp.float32
_LANE = 128
_VMEM_LIMIT = 32 * 1024 * 1024   # explicit scoped-VMEM budget, safe on v5e/v6e/v7x


def _round_up(v, m):
    return ((v + m - 1) // m) * m


def _pad2(a, rows, cols):
    out = jnp.zeros((rows, cols), a.dtype)
    return out.at[:a.shape[0], :a.shape[1]].set(a)


def _blockdiag(att):
    """att [H, C] -> A [H*C, H] with A[h*C + c, h] = att[h, c]."""
    H, C = att.shape
    eye = jnp.eye(H, dtype=F32)
    return (att.astype(F32)[:, :, None] * eye[:, None, :]).reshape(H * C, H)


def _add_self_loops(edge_index, edge_attr, num_nodes):
    """PyG GATConv default: add_self_loops=True, fill_value='mean'."""
    src, dst = edge_index[0], edge_index[1]
    E = src.shape[0]
    sums = jax.ops.segment_sum(edge_attr, dst, num_segments=num_nodes)
    counts = jax.ops.segment_sum(jnp.ones((E,), edge_attr.dtype), dst,
                                 num_segments=num_nodes)
    loop_attr = sums / jnp.maximum(counts, 1.0)[:, None]
    ar = jnp.arange(num_nodes, dtype=src.dtype)
    src_a = jnp.concatenate([src, ar])
    dst_a = jnp.concatenate([dst, ar])
    ea_a = jnp.concatenate([edge_attr, loop_attr], axis=0)
    return src_a, dst_a, ea_a


# ---------------- kernel 1: node projections ----------------
def _node_proj_kernel(x_ref, w_ref, a_src_ref, a_dst_ref,
                      xp_ref, asrc_ref, adst_ref):
    xp = jnp.dot(x_ref[...], w_ref[...], preferred_element_type=F32)
    xp_ref[...] = xp
    asrc_ref[...] = jnp.dot(xp, a_src_ref[...], preferred_element_type=F32)
    adst_ref[...] = jnp.dot(xp, a_dst_ref[...], preferred_element_type=F32)


# -------- kernel 2: per-edge attention logits + gathered source messages ------
def _edge_proj_kernel(ea_ref, we_ref, a_edge_ref, s_src_ref, s_dst_ref,
                      xp_ref, ansrc_ref, andst_ref,
                      alpha_ref, xj_ref, *, negative_slope):
    ep = jnp.dot(ea_ref[...], we_ref[...], preferred_element_type=F32)
    a_e = jnp.dot(ep, a_edge_ref[...], preferred_element_type=F32)
    s_src = s_src_ref[...].astype(F32)       # one-hot rows; exact in bf16
    s_dst = s_dst_ref[...].astype(F32)
    a_fs = jnp.dot(s_src, ansrc_ref[...], preferred_element_type=F32)
    a_fd = jnp.dot(s_dst, andst_ref[...], preferred_element_type=F32)
    alpha = a_fs + a_fd + a_e
    alpha_ref[...] = jnp.where(alpha > 0, alpha, negative_slope * alpha)
    xj_ref[...] = jnp.dot(s_src, xp_ref[...], preferred_element_type=F32)


# -------- kernel 3: online segment softmax + scatter-aggregate + epilogue -----
def _aggregate_kernel(s_dst_ref, alpha_ref, xj_ref, expand_ref, mean_ref,
                      cbias_ref, out_ref, m_acc, l_acc, num_acc):
    NEG = F32(-1e30)

    @pl.when(pl.program_id(1) == 0)
    def _():
        m_acc[...] = jnp.full(m_acc.shape, NEG, F32)
        l_acc[...] = jnp.zeros(l_acc.shape, F32)
        num_acc[...] = jnp.zeros(num_acc.shape, F32)

    s_dst = s_dst_ref[...].astype(F32)          # [Eb, Nb]
    alpha = alpha_ref[...]                      # [Eb, Hp]
    xj = xj_ref[...]                            # [Eb, HCp]
    expand = expand_ref[...]                    # [Hp, HCp] (head -> head*chan)

    eb, nb = s_dst.shape
    hp = alpha.shape[1]

    # block max per (head, destination node) -- single masked build, all heads
    masked = jnp.where(jnp.broadcast_to(s_dst[:, None, :] > 0, (eb, hp, nb)),
                       jnp.broadcast_to(alpha[:, :, None], (eb, hp, nb)),
                       NEG)
    m_blk = jnp.max(masked, axis=0)             # [Hp, Nb]

    m_prev = m_acc[...]
    m_new = jnp.maximum(m_prev, m_blk)
    corr = jnp.exp(m_prev - m_new)              # [Hp, Nb], always <= 1

    # gather running max back onto edges (one-hot matmul; exact)
    m_e = lax.dot_general(s_dst, m_new, (((1,), (1,)), ((), ())),
                          preferred_element_type=F32)        # [Eb, Hp]
    p = jnp.exp(alpha - m_e)                                 # [Eb, Hp], <= 1

    # expand heads to head*channel lanes and weight the messages
    p_exp = jnp.dot(p, expand, preferred_element_type=F32)   # [Eb, HCp]
    weighted = p_exp * xj                                    # [Eb, HCp]

    # scatter-add to destination nodes as MXU matmuls contracting over edges
    l_blk = lax.dot_general(p, s_dst, (((0,), (0,)), ((), ())),
                            preferred_element_type=F32)      # [Hp, Nb]
    num_blk = lax.dot_general(s_dst, weighted, (((0,), (0,)), ((), ())),
                              preferred_element_type=F32)    # [Nb, HCp]
    corr_exp = lax.dot_general(corr, expand, (((0,), (0,)), ((), ())),
                               preferred_element_type=F32)   # [Nb, HCp]

    l_acc[...] = corr * l_acc[...] + l_blk
    num_acc[...] = corr_exp * num_acc[...] + num_blk
    m_acc[...] = m_new

    @pl.when(pl.program_id(1) == pl.num_programs(1) - 1)
    def _():
        l_exp = lax.dot_general(l_acc[...], expand, (((0,), (0,)), ((), ())),
                                preferred_element_type=F32)  # [Nb, HCp]
        # tiny guard also keeps padded columns (0/0) finite
        inv_l = pl.reciprocal(jnp.maximum(l_exp, F32(1e-30)), approx=True)
        out_heads = num_acc[...] * inv_l                     # [Nb, HCp]
        # head-mean via constant matmul; gat_bias & layer bias folded into cbias
        out = jnp.dot(out_heads, mean_ref[...], preferred_element_type=F32)
        out = out + cbias_ref[...]
        out_ref[...] = jnp.maximum(out, 0.0)                 # ReLU


def sgat_forward(x, edge_index, edge_attr, params, *, heads, out_channels,
                 negative_slope=0.2, node_block=128, edge_block=64):
    assert node_block % 128 == 0
    assert edge_block % 16 == 0      # bf16 sublane tiling of the one-hot blocks
    N, f_in = x.shape
    H, C = heads, out_channels
    HC = H * C
    De = edge_attr.shape[1]

    # --- graph preprocessing glue (self-loops, one-hot matrices) ---
    src_a, dst_a, ea_a = _add_self_loops(edge_index, edge_attr, N)
    E = int(src_a.shape[0])

    # padded geometry: lane dims -> 128, sublane dims -> block multiples
    n_p = _round_up(max(N, node_block), node_block)
    e_p = _round_up(max(E, edge_block), edge_block)
    fin_p = _round_up(f_in, _LANE)
    de_p = _round_up(De, _LANE)
    hc_p = _round_up(HC, _LANE)
    c_p = _round_up(C, _LANE)
    h_p = _round_up(H, 8)

    n_nb = n_p // node_block
    n_eb = e_p // edge_block

    x_p = _pad2(x.astype(F32), n_p, fin_p)
    ea_p = _pad2(ea_a.astype(F32), e_p, de_p)
    # one-hot gather/scatter matrices in bf16 (0/1 exact, half the HBM traffic)
    s_src = _pad2(jax.nn.one_hot(src_a, N, dtype=jnp.bfloat16), e_p, n_p)
    s_dst = _pad2(jax.nn.one_hot(dst_a, N, dtype=jnp.bfloat16), e_p, n_p)

    w_p = _pad2(params["W"].astype(F32), fin_p, hc_p)
    we_p = _pad2(params["W_edge"].astype(F32), de_p, hc_p)
    a_src = _pad2(_blockdiag(params["att_src"]), hc_p, h_p)
    a_dst = _pad2(_blockdiag(params["att_dst"]), hc_p, h_p)
    a_edge = _pad2(_blockdiag(params["att_edge"]), hc_p, h_p)

    # head -> head*channel lane expansion, and head-mean matrix (combine='mean')
    expand = jnp.zeros((h_p, hc_p), F32).at[
        jnp.repeat(jnp.arange(H), C), jnp.arange(HC)].set(1.0)
    mean_mat = jnp.zeros((hc_p, c_p), F32).at[
        jnp.arange(HC), jnp.tile(jnp.arange(C), H)].set(1.0 / H)
    # fold GATConv bias (mean over heads) and the SGATLayer bias into one row
    comb_bias = params["gat_bias"].astype(F32).reshape(H, C).mean(axis=0) \
        + params["bias"].astype(F32)
    comb_bias = _pad2(comb_bias[None, :], 1, c_p)

    cparams_1d = pltpu.CompilerParams(dimension_semantics=("parallel",),
                                      vmem_limit_bytes=_VMEM_LIMIT)

    # ---- kernel 1: node projections ----
    xp, an_src, an_dst = pl.pallas_call(
        _node_proj_kernel,
        out_shape=(jax.ShapeDtypeStruct((n_p, hc_p), F32),
                   jax.ShapeDtypeStruct((n_p, h_p), F32),
                   jax.ShapeDtypeStruct((n_p, h_p), F32)),
        grid=(n_nb,),
        in_specs=[pl.BlockSpec((node_block, fin_p), lambda i: (i, 0)),
                  pl.BlockSpec((fin_p, hc_p), lambda i: (0, 0)),
                  pl.BlockSpec((hc_p, h_p), lambda i: (0, 0)),
                  pl.BlockSpec((hc_p, h_p), lambda i: (0, 0))],
        out_specs=(pl.BlockSpec((node_block, hc_p), lambda i: (i, 0)),
                   pl.BlockSpec((node_block, h_p), lambda i: (i, 0)),
                   pl.BlockSpec((node_block, h_p), lambda i: (i, 0))),
        compiler_params=cparams_1d,
    )(x_p, w_p, a_src, a_dst)

    # ---- kernel 2: per-edge logits + gathered source messages ----
    alpha, xj = pl.pallas_call(
        functools.partial(_edge_proj_kernel, negative_slope=negative_slope),
        out_shape=(jax.ShapeDtypeStruct((e_p, h_p), F32),
                   jax.ShapeDtypeStruct((e_p, hc_p), F32)),
        grid=(n_eb,),
        in_specs=[pl.BlockSpec((edge_block, de_p), lambda j: (j, 0)),
                  pl.BlockSpec((de_p, hc_p), lambda j: (0, 0)),
                  pl.BlockSpec((hc_p, h_p), lambda j: (0, 0)),
                  pl.BlockSpec((edge_block, n_p), lambda j: (j, 0)),
                  pl.BlockSpec((edge_block, n_p), lambda j: (j, 0)),
                  pl.BlockSpec((n_p, hc_p), lambda j: (0, 0)),
                  pl.BlockSpec((n_p, h_p), lambda j: (0, 0)),
                  pl.BlockSpec((n_p, h_p), lambda j: (0, 0))],
        out_specs=(pl.BlockSpec((edge_block, h_p), lambda j: (j, 0)),
                   pl.BlockSpec((edge_block, hc_p), lambda j: (j, 0))),
        compiler_params=cparams_1d,
    )(ea_p, we_p, a_edge, s_src, s_dst, xp, an_src, an_dst)

    # ---- kernel 3: online segment softmax + aggregation + fused epilogue ----
    out_p = pl.pallas_call(
        _aggregate_kernel,
        out_shape=jax.ShapeDtypeStruct((n_p, c_p), F32),
        grid=(n_nb, n_eb),
        in_specs=[pl.BlockSpec((edge_block, node_block), lambda i, j: (j, i)),
                  pl.BlockSpec((edge_block, h_p), lambda i, j: (j, 0)),
                  pl.BlockSpec((edge_block, hc_p), lambda i, j: (j, 0)),
                  pl.BlockSpec((h_p, hc_p), lambda i, j: (0, 0)),
                  pl.BlockSpec((hc_p, c_p), lambda i, j: (0, 0)),
                  pl.BlockSpec((1, c_p), lambda i, j: (0, 0))],
        out_specs=pl.BlockSpec((node_block, c_p), lambda i, j: (i, 0)),
        scratch_shapes=[pltpu.VMEM((h_p, node_block), F32),   # running max
                        pltpu.VMEM((h_p, node_block), F32),   # running denom
                        pltpu.VMEM((node_block, hc_p), F32)], # running numer
        compiler_params=pltpu.CompilerParams(
            dimension_semantics=("parallel", "arbitrary"),
            vmem_limit_bytes=_VMEM_LIMIT),
    )(s_dst, alpha, xj, expand, mean_mat, comb_bias)

    return out_p[:N, :C]


def sgat_reference(x, edge_index, edge_attr, params, *, heads, out_channels,
                   negative_slope=0.2):
    """Plain-JAX reference (gather / segment ops) for correctness checking."""
    N = x.shape[0]
    H, C = heads, out_channels
    src_a, dst_a, ea_a = _add_self_loops(edge_index, edge_attr, N)

    xp = (x @ params["W"]).reshape(N, H, C)
    ep = (ea_a @ params["W_edge"]).reshape(-1, H, C)
    a_src = (xp * params["att_src"][None]).sum(-1)      # [N, H]
    a_dst = (xp * params["att_dst"][None]).sum(-1)      # [N, H]
    a_edge = (ep * params["att_edge"][None]).sum(-1)    # [E', H]
    alpha = a_src[src_a] + a_dst[dst_a] + a_edge
    alpha = jnp.where(alpha > 0, alpha, negative_slope * alpha)
    m = jax.ops.segment_max(alpha, dst_a, num_segments=N)
    p = jnp.exp(alpha - m[dst_a])
    denom = jax.ops.segment_sum(p, dst_a, num_segments=N)
    w = p / denom[dst_a]
    msg = xp[src_a] * w[:, :, None]
    out = jax.ops.segment_sum(msg, dst_a, num_segments=N)    # [N, H, C]
    out = out.reshape(N, H * C) + params["gat_bias"]
    out = out.reshape(N, H, C).mean(axis=1) + params["bias"]
    return jax.nn.relu(out)


if __name__ == "__main__":
    key = jax.random.PRNGKey(0)
    N, E = 16, 32
    in_channels, out_channels, heads, edge_dim = 8, 8, 4, 4

    ks = jax.random.split(key, 11)
    x = jax.random.normal(ks[0], (N, in_channels), jnp.float32)
    src = jax.random.randint(ks[1], (E,), 0, N)
    dst = jax.random.randint(ks[2], (E,), 0, N)
    dst = jnp.where(dst == src, (dst + 1) % N, dst)   # raw graph has no self-loops
    edge_index = jnp.stack([src, dst])
    edge_attr = jax.random.normal(ks[3], (E, edge_dim), jnp.float32)

    params = {
        "W": 0.3 * jax.random.normal(ks[4], (in_channels, heads * out_channels), jnp.float32),
        "W_edge": 0.3 * jax.random.normal(ks[5], (edge_dim, heads * out_channels), jnp.float32),
        "att_src": 0.3 * jax.random.normal(ks[6], (heads, out_channels), jnp.float32),
        "att_dst": 0.3 * jax.random.normal(ks[7], (heads, out_channels), jnp.float32),
        "att_edge": 0.3 * jax.random.normal(ks[8], (heads, out_channels), jnp.float32),
        # PyTorch zero-inits these; small random values here exercise the
        # bias-folding path without changing module semantics.
        "gat_bias": 0.1 * jax.random.normal(ks[9], (heads * out_channels,), jnp.float32),
        "bias": 0.1 * jax.random.normal(ks[10], (out_channels,), jnp.float32),
    }

    # edge_block=32 -> 2 edge blocks: exercises the online-softmax accumulator.
    out = sgat_forward(x, edge_index, edge_attr, params,
                       heads=heads, out_channels=out_channels,
                       node_block=128, edge_block=32)
    out = jax.block_until_ready(out)

    ref = sgat_reference(x, edge_index, edge_attr, params,
                         heads=heads, out_channels=out_channels)
    assert out.shape == (N, out_channels)
    err = float(jnp.max(jnp.abs(out - ref)))
    assert jnp.allclose(out, ref, atol=2e-3, rtol=2e-3), err
    print("KERNEL_OK")
</pallas_src>

<mosaic_0001>
module attributes {stable_mosaic.version = 11 : i64} {
  func.func @_node_proj_kernel(%arg0: i32, %arg1: memref<128x128xf32, #tpu.memory_space<vmem>>, %arg2: memref<128x128xf32, #tpu.memory_space<vmem>>, %arg3: memref<128x8xf32, #tpu.memory_space<vmem>>, %arg4: memref<128x8xf32, #tpu.memory_space<vmem>>, %arg5: memref<128x128xf32, #tpu.memory_space<vmem>>, %arg6: memref<128x8xf32, #tpu.memory_space<vmem>>, %arg7: memref<128x8xf32, #tpu.memory_space<vmem>>) attributes {dimension_semantics = [#tpu.dimension_semantics<parallel>], iteration_bounds = array<i64: 1>, scalar_prefetch = 0 : i64, scratch_operands = 0 : i64, tpu.core_type = #tpu.core_type<tc>, window_params = [{transform_indices = @transform_0, window_bounds = array<i64: 128, 128>}, {pipeline_mode = #tpu.pipeline_mode<synchronous>, transform_indices = @transform_1, window_bounds = array<i64: 128, 128>}, {pipeline_mode = #tpu.pipeline_mode<synchronous>, transform_indices = @transform_2, window_bounds = array<i64: 128, 8>}, {pipeline_mode = #tpu.pipeline_mode<synchronous>, transform_indices = @transform_3, window_bounds = array<i64: 128, 8>}, {transform_indices = @transform_4, window_bounds = array<i64: 128, 128>}, {transform_indices = @transform_5, window_bounds = array<i64: 128, 8>}, {transform_indices = @transform_6, window_bounds = array<i64: 128, 8>}]} {
    %c0 = arith.constant 0 : index
    %c0_0 = arith.constant 0 : index
    %0 = vector.load %arg1[%c0, %c0_0] : memref<128x128xf32, #tpu.memory_space<vmem>>, vector<128x128xf32>
    %c0_1 = arith.constant 0 : index
    %c0_2 = arith.constant 0 : index
    %1 = vector.load %arg2[%c0_1, %c0_2] : memref<128x128xf32, #tpu.memory_space<vmem>>, vector<128x128xf32>
    %cst = arith.constant dense<0.000000e+00> : vector<128x128xf32>
    %2 = tpu.matmul %0, %1, %cst {dimension_numbers = #tpu.dot_dimension_numbers<[1], [0], [0], [1], [0, 0, 1, 1], [], []>} : vector<128x128xf32>, vector<128x128xf32>, vector<128x128xf32> -> vector<128x128xf32>
    %c0_3 = arith.constant 0 : index
    %c0_4 = arith.constant 0 : index
    %3 = vector.load %arg5[%c0_3, %c0_4] : memref<128x128xf32, #tpu.memory_space<vmem>>, vector<128x128xf32>
    tpu.vector_store %arg5[%c0_3, %c0_4], %2 {strides = array<i32>} : memref<128x128xf32, #tpu.memory_space<vmem>>, vector<128x128xf32>,
    %c0_5 = arith.constant 0 : index
    %c0_6 = arith.constant 0 : index
    %4 = vector.load %arg3[%c0_5, %c0_6] : memref<128x8xf32, #tpu.memory_space<vmem>>, vector<128x8xf32>
    %cst_7 = arith.constant dense<0.000000e+00> : vector<128x8xf32>
    %5 = tpu.matmul %2, %4, %cst_7 {dimension_numbers = #tpu.dot_dimension_numbers<[1], [0], [0], [1], [0, 0, 1, 1], [], []>} : vector<128x128xf32>, vector<128x8xf32>, vector<128x8xf32> -> vector<128x8xf32>
    %c0_8 = arith.constant 0 : index
    %c0_9 = arith.constant 0 : index
    %6 = vector.load %arg6[%c0_8, %c0_9] : memref<128x8xf32, #tpu.memory_space<vmem>>, vector<128x8xf32>
    tpu.vector_store %arg6[%c0_8, %c0_9], %5 {strides = array<i32>} : memref<128x8xf32, #tpu.memory_space<vmem>>, vector<128x8xf32>,
    %c0_10 = arith.constant 0 : index
    %c0_11 = arith.constant 0 : index
    %7 = vector.load %arg4[%c0_10, %c0_11] : memref<128x8xf32, #tpu.memory_space<vmem>>, vector<128x8xf32>
    %cst_12 = arith.constant dense<0.000000e+00> : vector<128x8xf32>
    %8 = tpu.matmul %2, %7, %cst_12 {dimension_numbers = #tpu.dot_dimension_numbers<[1], [0], [0], [1], [0, 0, 1, 1], [], []>} : vector<128x128xf32>, vector<128x8xf32>, vector<128x8xf32> -> vector<128x8xf32>
    %c0_13 = arith.constant 0 : index
    %c0_14 = arith.constant 0 : index
    %9 = vector.load %arg7[%c0_13, %c0_14] : memref<128x8xf32, #tpu.memory_space<vmem>>, vector<128x8xf32>
    tpu.vector_store %arg7[%c0_13, %c0_14], %8 {strides = array<i32>} : memref<128x8xf32, #tpu.memory_space<vmem>>, vector<128x8xf32>,
    return
  }
  func.func @transform_0(%arg0: i32) -> (i32, i32) {
    %c0_i32 = arith.constant 0 : i32
    %c0_i32_0 = arith.constant 0 : i32
    return %arg0, %c0_i32 : i32, i32
  }
  func.func @transform_1(%arg0: i32) -> (i32, i32) {
    %c0_i32 = arith.constant 0 : i32
    %c0_i32_0 = arith.constant 0 : i32
    %c0_i32_1 = arith.constant 0 : i32
    return %c0_i32, %c0_i32_0 : i32, i32
  }
  func.func @transform_2(%arg0: i32) -> (i32, i32) {
    %c0_i32 = arith.constant 0 : i32
    %c0_i32_0 = arith.constant 0 : i32
    %c0_i32_1 = arith.constant 0 : i32
    return %c0_i32, %c0_i32_0 : i32, i32
  }
  func.func @transform_3(%arg0: i32) -> (i32, i32) {
    %c0_i32 = arith.constant 0 : i32
    %c0_i32_0 = arith.constant 0 : i32
    %c0_i32_1 = arith.constant 0 : i32
    return %c0_i32, %c0_i32_0 : i32, i32
  }
  func.func @transform_4(%arg0: i32) -> (i32, i32) {
    %c0_i32 = arith.constant 0 : i32
    %c0_i32_0 = arith.constant 0 : i32
    return %arg0, %c0_i32 : i32, i32
  }
  func.func @transform_5(%arg0: i32) -> (i32, i32) {
    %c0_i32 = arith.constant 0 : i32
    %c0_i32_0 = arith.constant 0 : i32
    return %arg0, %c0_i32 : i32, i32
  }
  func.func @transform_6(%arg0: i32) -> (i32, i32) {
    %c0_i32 = arith.constant 0 : i32
    %c0_i32_0 = arith.constant 0 : i32
    return %arg0, %c0_i32 : i32, i32
  }
}

</mosaic_0001>

<bundles_post_ra>
// kernel: tpu_custom_call.1
= control target key start
LH: loop header
LB: loop body
LE: loop exit
PB: predicated region body
PF: predicated region fallthrough
CT: control target
= control target key end

     0   :  { %s821_s0 = inlined_call_operand.vmem [shape: f32[128,128], index: 0, kind: input, shape index: {}]   ;;  %s822_s1 = inlined_call_operand.vmem [shape: f32[128,128], index: 1, kind: input, shape index: {}]   ;;  %s823_s2 = inlined_call_operand.vmem [shape: f32[128,8], index: 2, kind: input, shape index: {}]   ;;  %s824_s3 = inlined_call_operand.vmem [shape: f32[128,8], index: 3, kind: input, shape index: {}]   ;;  %s825_s4 = inlined_call_operand.hbm [shape: f32[128,128], index: 4, kind: output, shape index: {0}]   ;;  %s826_s5 = inlined_call_operand.vmem [shape: f32[128,8], index: 5, kind: output, shape index: {1}]   ;;  %s827_s6 = inlined_call_operand.vmem [shape: f32[128,8], index: 6, kind: output, shape index: {2}]  }
   0x1   :  { %v52_v0 = vld [vmem:[%s822_s1 + $0x78] sm:$0xff]  ;;  %v51_v1 = vld [vmem:[%s822_s1 + $0x70] sm:$0xff]  ;;  %v50_v2 = vld [vmem:[%s822_s1 + $0x68] sm:$0xff] }
   0x2   :  { %53 = vmatpush.msra.mxu0 %v52_v0  ;;  %355 = vmatpush.msra.mxu3 %v52_v0  ;;  %v49_v3 = vld [vmem:[%s822_s1 + $0x60] sm:$0xff]  ;;  %v48_v4 = vld [vmem:[%s822_s1 + $0x58] sm:$0xff] }
   0x4   :  { %54 = vmatpush.msra.mxu0 %v51_v1  ;;  %356 = vmatpush.msra.mxu3 %v51_v1 }
   0x6   :  { %55 = vmatpush.msra.mxu0 %v50_v2  ;;  %357 = vmatpush.msra.mxu3 %v50_v2 }
   0x7   :  { %12 = vsyncpa [#allocation3], 0  ;;  %v47_v5 = vld [vmem:[%s822_s1 + $0x50] sm:$0xff]  ;;  %v46_v6 = vld [vmem:[%s822_s1 + $0x48] sm:$0xff]  ;;  %s335_s26 = sshll.u32 %s825_s4, 4  ;;  %s433_s27 = smov 128   ;;  %s336_s26 = int_to_ptr.hbm [resolvable:$true] %s335_s26 }
   0x8   :  { %56 = vmatpush.msra.mxu0 %v49_v3  ;;  %358 = vmatpush.msra.mxu3 %v49_v3  ;;  %v45_v7 = vld [vmem:[%s822_s1 + $0x40] sm:$0xff]  ;;  %v44_v8 = vld [vmem:[%s822_s1 + $0x38] sm:$0xff]  ;;  %v43_v9 = vld [vmem:[%s822_s1 + $0x30] sm:$0xff]  ;;  %s434_s28 = smov 8   ;;  %vm215_vm0 = vcmask 64512  }
   0x9   :  { %v42_v10 = vld [vmem:[%s822_s1 + $0x28] sm:$0xff]  ;;  %v41_v11 = vld [vmem:[%s822_s1 + $0x20] sm:$0xff]  ;;  %v40_v12 = vld [vmem:[%s822_s1 + $0x18] sm:$0xff] }
   0xa   :  { %57 = vmatpush.msra.mxu0 %v48_v4  ;;  %359 = vmatpush.msra.mxu3 %v48_v4  ;;  %v39_v13 = vld [vmem:[%s822_s1 + $0x10] sm:$0xff]  ;;  %v38_v14 = vld [vmem:[%s822_s1 + $0x8] sm:$0xff]  ;;  %v37_v15 = vld [vmem:[%s822_s1] sm:$0xff] }
   0xb   :  { %v21_v16 = vld [vmem:[%s821_s0] sm:$0xff]  ;;  %v22_v18 = vld [vmem:[%s821_s0 + $0x8] sm:$0xff]  ;;  %v23_v20 = vld [vmem:[%s821_s0 + $0x10] sm:$0xff] }
   0xc   :  { %58 = vmatpush.msra.mxu0 %v47_v5  ;;  %360 = vmatpush.msra.mxu3 %v47_v5  ;;  %v33_v17 = vld [vmem:[%s821_s0 + $0x60] sm:$0xff]  ;;  %v34_v19 = vld [vmem:[%s821_s0 + $0x68] sm:$0xff]  ;;  %v35_v21 = vld [vmem:[%s821_s0 + $0x70] sm:$0xff] }
   0xd   :  { %v24_v22 = vld [vmem:[%s821_s0 + $0x18] sm:$0xff]  ;;  %v25_v24 = vld [vmem:[%s821_s0 + $0x20] sm:$0xff]  ;;  %v26_v25 = vld [vmem:[%s821_s0 + $0x28] sm:$0xff] }
   0xe   :  { %59 = vmatpush.msra.mxu0 %v46_v6  ;;  %361 = vmatpush.msra.mxu3 %v46_v6  ;;  %v36_v23 = vld [vmem:[%s821_s0 + $0x78] sm:$0xff]  ;;  %v27_v26 = vld [vmem:[%s821_s0 + $0x30] sm:$0xff]  ;;  %v147_v32 = vld [vmem:[%s823_s2 + $0x68] sm:$0xff] }
   0xf   :  { %v28_v27 = vld [vmem:[%s821_s0 + $0x38] sm:$0xff]  ;;  %v148_v30 = vld [vmem:[%s823_s2 + $0x70] sm:$0xff]  ;;  %v577_v33 = vld [vmem:[%s824_s3 + $0x68] sm:$0xff] }
  0x10   :  { %60 = vmatpush.msra.mxu0 %v45_v7  ;;  %362 = vmatpush.msra.mxu3 %v45_v7  ;;  %v149_v28 = vld [vmem:[%s823_s2 + $0x78] sm:$0xff]  ;;  %v569_v31 = vld [vmem:[%s824_s3 + $0x70] sm:$0xff]  ;;  %v146_v34 = vld [vmem:[%s823_s2 + $0x60] sm:$0xff] }
  0x11   :  { %v560_v29 = vld [vmem:[%s824_s3 + $0x78] sm:$0xff]  ;;  %150 = vmatpush.msra.mxu1 %v149_v28  ;;  %v586_v35 = vld [vmem:[%s824_s3 + $0x60] sm:$0xff]  ;;  %v144_v39 = vld [vmem:[%s823_s2 + $0x50] sm:$0xff] }
  0x12   :  { %61 = vmatpush.msra.mxu0 %v44_v8  ;;  %363 = vmatpush.msra.mxu3 %v44_v8  ;;  %v29_v36 = vld [vmem:[%s821_s0 + $0x40] sm:$0xff]  ;;  %v145_v37 = vld [vmem:[%s823_s2 + $0x58] sm:$0xff]  ;;  %v607_v40 = vld [vmem:[%s824_s3 + $0x50] sm:$0xff] }
  0x13   :  { %248 = vmatpush.msra.mxu2 %v560_v29  ;;  %151 = vmatpush.msra.mxu1 %v148_v30  ;;  %v598_v38 = vld [vmem:[%s824_s3 + $0x58] sm:$0xff]  ;;  %v143_v41 = vld [vmem:[%s823_s2 + $0x48] sm:$0xff]  ;;  %v142_v43 = vld [vmem:[%s823_s2 + $0x40] sm:$0xff] }
  0x14   :  { %62 = vmatpush.msra.mxu0 %v43_v9  ;;  %364 = vmatpush.msra.mxu3 %v43_v9  ;;  %v616_v42 = vld [vmem:[%s824_s3 + $0x48] sm:$0xff]  ;;  %v240_v44 = vld [vmem:[%s824_s3 + $0x40] sm:$0xff]  ;;  %v141_v46 = vld [vmem:[%s823_s2 + $0x38] sm:$0xff] }
  0x15   :  { %249 = vmatpush.msra.mxu2 %v569_v31  ;;  %152 = vmatpush.msra.mxu1 %v147_v32  ;;  %v30_v45 = vld [vmem:[%s821_s0 + $0x48] sm:$0xff]  ;;  %v239_v47 = vld [vmem:[%s824_s3 + $0x38] sm:$0xff]  ;;  %v140_v48 = vld [vmem:[%s823_s2 + $0x30] sm:$0xff] }
  0x16   :  { %63 = vmatpush.msra.mxu0 %v42_v10  ;;  %365 = vmatpush.msra.mxu3 %v42_v10  ;;  %v238_v49 = vld [vmem:[%s824_s3 + $0x30] sm:$0xff]  ;;  %v139_v50 = vld [vmem:[%s823_s2 + $0x28] sm:$0xff]  ;;  %v138_v52 = vld [vmem:[%s823_s2 + $0x20] sm:$0xff] }
  0x17   :  { %250 = vmatpush.msra.mxu2 %v577_v33  ;;  %153 = vmatpush.msra.mxu1 %v146_v34  ;;  %v237_v51 = vld [vmem:[%s824_s3 + $0x28] sm:$0xff]  ;;  %v236_v53 = vld [vmem:[%s824_s3 + $0x20] sm:$0xff]  ;;  %v31_v54 = vld [vmem:[%s821_s0 + $0x50] sm:$0xff] }
  0x18   :  { %64 = vmatpush.msra.mxu0 %v41_v11  ;;  %366 = vmatpush.msra.mxu3 %v41_v11  ;;  %v137_v55 = vld [vmem:[%s823_s2 + $0x18] sm:$0xff]  ;;  %v136_v57 = vld [vmem:[%s823_s2 + $0x10] sm:$0xff]  ;;  %v135_v59 = vld [vmem:[%s823_s2 + $0x8] sm:$0xff] }
  0x19   :  { %251 = vmatpush.msra.mxu2 %v586_v35  ;;  %154 = vmatpush.msra.mxu1 %v145_v37  ;;  %v235_v56 = vld [vmem:[%s824_s3 + $0x18] sm:$0xff]  ;;  %v234_v58 = vld [vmem:[%s824_s3 + $0x10] sm:$0xff]  ;;  %v233_v60 = vld [vmem:[%s824_s3 + $0x8] sm:$0xff] }
  0x1a   :  { %65 = vmatpush.msra.mxu0 %v40_v12  ;;  %367 = vmatpush.msra.mxu3 %v40_v12  ;;  %v32_v61 = vld [vmem:[%s821_s0 + $0x58] sm:$0xff]  ;;  %v134_v62 = vld [vmem:[%s823_s2] sm:$0xff]  ;;  %s432_s0 = smov [#allocation2]  }
  0x1b   :  { %252 = vmatpush.msra.mxu2 %v598_v38  ;;  %155 = vmatpush.msra.mxu1 %v144_v39  ;;  %v232_v63 = vld [vmem:[%s824_s3] sm:$0xff]  ;;  %s333_s2 = sshll.u32 %s432_s0, 4  ;;  %s334_s2 = int_to_ptr.vmem [resolvable:$true] %s333_s2 }
  0x1c   :  { %66 = vmatpush.msra.mxu0 %v39_v13  ;;  %368 = vmatpush.msra.mxu3 %v39_v13 }
  0x1d   :  { %253 = vmatpush.msra.mxu2 %v607_v40  ;;  %156 = vmatpush.msra.mxu1 %v143_v41 }
  0x1e   :  { %67 = vmatpush.msra.mxu0 %v38_v14  ;;  %369 = vmatpush.msra.mxu3 %v38_v14 }
  0x1f   :  { %254 = vmatpush.msra.mxu2 %v616_v42  ;;  %157 = vmatpush.msra.mxu1 %v142_v43 }
  0x20   :  { %68 = vmatpush.msra.mxu0 %v37_v15  ;;  %370 = vmatpush.msra.mxu3 %v37_v15 }
  0x21   :  { %69 = vmatmul.f32.vlgmr.msra.gmra.mxu0 %v21_v16  ;;  %105 = vmatmul.f32.vlgmr.msra.gmra.mxu3 %v33_v17 }
  0x22   :  { %371 = vmatpush.msrb.mxu3 %v149_v28  ;;  %255 = vmatpush.msra.mxu2 %v240_v44 }
  0x23   :  { %158 = vmatpush.msra.mxu1 %v141_v46 }
  0x24   :  { %372 = vmatpush.msrb.mxu3 %v148_v30  ;;  %256 = vmatpush.msra.mxu2 %v239_v47 }
  0x25   :  { %159 = vmatpush.msra.mxu1 %v140_v48 }
  0x26   :  { %373 = vmatpush.msrb.mxu3 %v147_v32  ;;  %257 = vmatpush.msra.mxu2 %v238_v49 }
  0x27   :  { %160 = vmatpush.msra.mxu1 %v139_v50 }
  0x28   :  { %374 = vmatpush.msrb.mxu3 %v146_v34  ;;  %258 = vmatpush.msra.mxu2 %v237_v51 }
  0x29   :  { %72 = vmatmul.f32.gmra.mxu0 %v22_v18  ;;  %108 = vmatmul.f32.gmra.mxu3 %v34_v19 }
  0x2a   :  { %375 = vmatpush.msrb.mxu3 %v145_v37  ;;  %161 = vmatpush.msra.mxu1 %v138_v52 }
  0x2b   :  { %259 = vmatpush.msra.mxu2 %v236_v53 }
  0x2c   :  { %376 = vmatpush.msrb.mxu3 %v144_v39  ;;  %162 = vmatpush.msra.mxu1 %v137_v55 }
  0x2d   :  { %260 = vmatpush.msra.mxu2 %v235_v56 }
  0x2e   :  { %377 = vmatpush.msrb.mxu3 %v143_v41  ;;  %163 = vmatpush.msra.mxu1 %v136_v57 }
  0x2f   :  { %261 = vmatpush.msra.mxu2 %v234_v58 }
  0x30   :  { %378 = vmatpush.msrb.mxu3 %v142_v43  ;;  %164 = vmatpush.msra.mxu1 %v135_v59 }
  0x31   :  { %75 = vmatmul.f32.gmra.mxu0 %v23_v20  ;;  %111 = vmatmul.f32.gmra.mxu3 %v35_v21 }
  0x32   :  { %379 = vmatpush.msrb.mxu3 %v141_v46  ;;  %262 = vmatpush.msra.mxu2 %v233_v60 }
  0x33   :  { %165 = vmatpush.msra.mxu1 %v134_v62 }
  0x34   :  { %380 = vmatpush.msrb.mxu3 %v140_v48  ;;  %263 = vmatpush.msra.mxu2 %v232_v63 }
  0x36   :  { %381 = vmatpush.msrb.mxu3 %v139_v50 }
  0x38   :  { %382 = vmatpush.msrb.mxu3 %v138_v52 }
  0x39   :  { %78 = vmatmul.f32.gmra.mxu0 %v24_v22  ;;  %114 = vmatmul.f32.gmra.mxu3 %v36_v23 }
  0x3a   :  { %383 = vmatpush.msrb.mxu3 %v137_v55 }
  0x3c   :  { %384 = vmatpush.msrb.mxu3 %v136_v57 }
  0x3e   :  { %385 = vmatpush.msrb.mxu3 %v135_v59 }
  0x40   :  { %386 = vmatpush.msrb.mxu3 %v134_v62 }
  0x41   :  { %81 = vmatmul.f32.gmra.mxu0 %v25_v24 }
  0x42   :  { %387 = vmatpush.msra.mxu3 %v560_v29 }
  0x44   :  { %388 = vmatpush.msra.mxu3 %v569_v31 }
  0x46   :  { %389 = vmatpush.msra.mxu3 %v577_v33 }
  0x48   :  { %390 = vmatpush.msra.mxu3 %v586_v35 }
  0x49   :  { %84 = vmatmul.f32.gmra.mxu0 %v26_v25 }
  0x4a   :  { %391 = vmatpush.msra.mxu3 %v598_v38 }
  0x4c   :  { %392 = vmatpush.msra.mxu3 %v607_v40 }
  0x4e   :  { %393 = vmatpush.msra.mxu3 %v616_v42 }
  0x50   :  { %394 = vmatpush.msra.mxu3 %v240_v44 }
  0x51   :  { %87 = vmatmul.f32.gmra.mxu0 %v27_v26 }
  0x52   :  { %395 = vmatpush.msra.mxu3 %v239_v47 }
  0x54   :  { %396 = vmatpush.msra.mxu3 %v238_v49 }
  0x56   :  { %397 = vmatpush.msra.mxu3 %v237_v51 }
  0x58   :  { %398 = vmatpush.msra.mxu3 %v236_v53 }
  0x59   :  { %90 = vmatmul.f32.gmra.mxu0 %v28_v27 }
  0x5a   :  { %399 = vmatpush.msra.mxu3 %v235_v56 }
  0x5c   :  { %400 = vmatpush.msra.mxu3 %v234_v58 }
  0x5e   :  { %401 = vmatpush.msra.mxu3 %v233_v60 }
  0x60   :  { %402 = vmatpush.msra.mxu3 %v232_v63 }
  0x61   :  { %93 = vmatmul.f32.gmra.mxu0 %v29_v36 }
  0x69   :  { %96 = vmatmul.f32.gmra.mxu0 %v30_v45 }
  0x71   :  { %99 = vmatmul.f32.gmra.mxu0 %v31_v54 }
  0x79   :  { %102 = vmatmul.f32.gmra.mxu0 %v32_v61 }
  0x9e   :  { %v70_v0 = vpop.f32.mrf.mxu0 }
  0x9f   :  { %118 = vst [vmem:[#allocation2] sm:$0xff] %v70_v0  ;;  %166 = vmatmul.f32.vlgmr.msra.gmra.mxu1 %v70_v0  ;;  %264 = vmatmul.f32.vlgmr.msra.gmra.mxu2 %v70_v0 }
  0xa4   :  { %v106_v1 = vpop.f32.mrf.mxu3 }
  0xa5   :  { %130 = vst [vmem:[#allocation2 + $0x60] sm:$0xff] %v106_v1  ;;  %202 = vmatmul.f32.vlgmr.msrb.gmra.mxu3 %v106_v1 }
  0xa6   :  { %v73_v2 = vpop.f32.mrf.mxu0 }
  0xa7   :  { %119 = vst [vmem:[#allocation2 + $0x8] sm:$0xff] %v73_v2  ;;  %169 = vmatmul.f32.gmra.mxu1 %v73_v2  ;;  %267 = vmatmul.f32.gmra.mxu2 %v73_v2 }
  0xac   :  { %v109_v3 = vpop.f32.mrf.mxu3 }
  0xad   :  { %131 = vst [vmem:[#allocation2 + $0x68] sm:$0xff] %v109_v3  ;;  %205 = vmatmul.f32.gmra.mxu3 %v109_v3 }
  0xae   :  { %v76_v4 = vpop.f32.mrf.mxu0 }
  0xaf   :  { %120 = vst [vmem:[#allocation2 + $0x10] sm:$0xff] %v76_v4  ;;  %172 = vmatmul.f32.gmra.mxu1 %v76_v4  ;;  %270 = vmatmul.f32.gmra.mxu2 %v76_v4 }
  0xb4   :  { %v112_v5 = vpop.f32.mrf.mxu3 }
  0xb5   :  { %132 = vst [vmem:[#allocation2 + $0x70] sm:$0xff] %v112_v5  ;;  %208 = vmatmul.f32.gmra.mxu3 %v112_v5 }
  0xb6   :  { %v79_v6 = vpop.f32.mrf.mxu0 }
  0xb7   :  { %121 = vst [vmem:[#allocation2 + $0x18] sm:$0xff] %v79_v6  ;;  %175 = vmatmul.f32.gmra.mxu1 %v79_v6  ;;  %273 = vmatmul.f32.gmra.mxu2 %v79_v6 }
  0xbc   :  { %v115_v7 = vpop.f32.mrf.mxu3 }
  0xbd   :  { %133 = vst [vmem:[#allocation2 + $0x78] sm:$0xff] %v115_v7  ;;  %211 = vmatmul.f32.gmra.mxu3 %v115_v7 }
  0xbe   :  { %v82_v8 = vpop.f32.mrf.mxu0 }
  0xbf   :  { %122 = vst [vmem:[#allocation2 + $0x20] sm:$0xff] %v82_v8  ;;  %178 = vmatmul.f32.gmra.mxu1 %v82_v8  ;;  %276 = vmatmul.f32.gmra.mxu2 %v82_v8 }
  0xc5   :  { %300 = vmatmul.f32.vlgmr.msra.gmra.mxu3 %v106_v1 }
  0xc6   :  { %v85_v9 = vpop.f32.mrf.mxu0 }
  0xc7   :  { %123 = vst [vmem:[#allocation2 + $0x28] sm:$0xff] %v85_v9  ;;  %181 = vmatmul.f32.gmra.mxu1 %v85_v9  ;;  %279 = vmatmul.f32.gmra.mxu2 %v85_v9 }
  0xcd   :  { %303 = vmatmul.f32.gmra.mxu3 %v109_v3 }
  0xce   :  { %v88_v10 = vpop.f32.mrf.mxu0 }
  0xcf   :  { %124 = vst [vmem:[#allocation2 + $0x30] sm:$0xff] %v88_v10  ;;  %184 = vmatmul.f32.gmra.mxu1 %v88_v10  ;;  %282 = vmatmul.f32.gmra.mxu2 %v88_v10 }
  0xd5   :  { %306 = vmatmul.f32.gmra.mxu3 %v112_v5 }
  0xd6   :  { %v91_v11 = vpop.f32.mrf.mxu0 }
  0xd7   :  { %125 = vst [vmem:[#allocation2 + $0x38] sm:$0xff] %v91_v11  ;;  %187 = vmatmul.f32.gmra.mxu1 %v91_v11  ;;  %285 = vmatmul.f32.gmra.mxu2 %v91_v11 }
  0xdd   :  { %309 = vmatmul.f32.gmra.mxu3 %v115_v7 }
  0xde   :  { %v94_v12 = vpop.f32.mrf.mxu0 }
  0xdf   :  { %126 = vst [vmem:[#allocation2 + $0x40] sm:$0xff] %v94_v12  ;;  %190 = vmatmul.f32.gmra.mxu1 %v94_v12  ;;  %288 = vmatmul.f32.gmra.mxu2 %v94_v12 }
  0xe6   :  { %v97_v13 = vpop.f32.mrf.mxu0 }
  0xe7   :  { %127 = vst [vmem:[#allocation2 + $0x48] sm:$0xff] %v97_v13  ;;  %193 = vmatmul.f32.gmra.mxu1 %v97_v13  ;;  %291 = vmatmul.f32.gmra.mxu2 %v97_v13 }
  0xee   :  { %v100_v14 = vpop.f32.mrf.mxu0 }
  0xef   :  { %128 = vst [vmem:[#allocation2 + $0x50] sm:$0xff] %v100_v14  ;;  %196 = vmatmul.f32.gmra.mxu1 %v100_v14  ;;  %294 = vmatmul.f32.gmra.mxu2 %v100_v14 }
  0xf6   :  { %v103_v15 = vpop.f32.mrf.mxu0 }
  0xf7   :  { %129 = vst [vmem:[#allocation2 + $0x58] sm:$0xff] %v103_v15  ;;  %199 = vmatmul.f32.gmra.mxu1 %v103_v15  ;;  %297 = vmatmul.f32.gmra.mxu2 %v103_v15 }
  0xf8   :  { %341 = dma.vmem_to_hbm [thread:$0]  %s334_s2, 2048, %s336_s26, [#allocation3], %s433_s27, %s433_s27, %s434_s28  }
 0x11c   :  { %v167_v16 = vpop.f32.mrf.mxu1 }
 0x11d   :  { %216 = vst.msk [vmem:[%s826_s5] sm:$0xff] %vm215_vm0, %v167_v16 }
 0x122   :  { %v265_v17 = vpop.f32.mrf.mxu2 }
 0x123   :  { %313 = vst.msk [vmem:[%s827_s6] sm:$0xff] %vm215_vm0, %v265_v17 }
 0x124   :  { %v170_v18 = vpop.f32.mrf.mxu1 }
 0x125   :  { %217 = vst.msk [vmem:[%s826_s5 + $0x8] sm:$0xff] %vm215_vm0, %v170_v18 }
 0x128   :  { %v203_v19 = vpop.f32.mrf.mxu3 }
 0x129   :  { %228 = vst.msk [vmem:[%s826_s5 + $0x60] sm:$0xff] %vm215_vm0, %v203_v19 }
 0x12a   :  { %v268_v20 = vpop.f32.mrf.mxu2 }
 0x12b   :  { %314 = vst.msk [vmem:[%s827_s6 + $0x8] sm:$0xff] %vm215_vm0, %v268_v20 }
 0x12c   :  { %v173_v21 = vpop.f32.mrf.mxu1 }
 0x12d   :  { %218 = vst.msk [vmem:[%s826_s5 + $0x10] sm:$0xff] %vm215_vm0, %v173_v21 }
 0x130   :  { %v206_v22 = vpop.f32.mrf.mxu3 }
 0x131   :  { %229 = vst.msk [vmem:[%s826_s5 + $0x68] sm:$0xff] %vm215_vm0, %v206_v22 }
 0x132   :  { %v271_v23 = vpop.f32.mrf.mxu2 }
 0x133   :  { %315 = vst.msk [vmem:[%s827_s6 + $0x10] sm:$0xff] %vm215_vm0, %v271_v23 }
 0x134   :  { %v176_v24 = vpop.f32.mrf.mxu1 }
 0x135   :  { %219 = vst.msk [vmem:[%s826_s5 + $0x18] sm:$0xff] %vm215_vm0, %v176_v24 }
 0x138   :  { %v209_v25 = vpop.f32.mrf.mxu3 }
 0x139   :  { %230 = vst.msk [vmem:[%s826_s5 + $0x70] sm:$0xff] %vm215_vm0, %v209_v25 }
 0x13a   :  { %v274_v26 = vpop.f32.mrf.mxu2 }
 0x13b   :  { %316 = vst.msk [vmem:[%s827_s6 + $0x18] sm:$0xff] %vm215_vm0, %v274_v26 }
 0x13c   :  { %v179_v27 = vpop.f32.mrf.mxu1 }
 0x13d   :  { %220 = vst.msk [vmem:[%s826_s5 + $0x20] sm:$0xff] %vm215_vm0, %v179_v27 }
 0x140   :  { %v212_v28 = vpop.f32.mrf.mxu3 }
 0x141   :  { %231 = vst.msk [vmem:[%s826_s5 + $0x78] sm:$0xff] %vm215_vm0, %v212_v28 }
 0x142   :  { %v277_v29 = vpop.f32.mrf.mxu2 }
 0x143   :  { %317 = vst.msk [vmem:[%s827_s6 + $0x20] sm:$0xff] %vm215_vm0, %v277_v29 }
 0x144   :  { %v182_v30 = vpop.f32.mrf.mxu1 }
 0x145   :  { %221 = vst.msk [vmem:[%s826_s5 + $0x28] sm:$0xff] %vm215_vm0, %v182_v30 }
 0x148   :  { %v301_v31 = vpop.f32.mrf.mxu3 }
 0x149   :  { %325 = vst.msk [vmem:[%s827_s6 + $0x60] sm:$0xff] %vm215_vm0, %v301_v31 }
 0x14a   :  { %v280_v32 = vpop.f32.mrf.mxu2 }
 0x14b   :  { %318 = vst.msk [vmem:[%s827_s6 + $0x28] sm:$0xff] %vm215_vm0, %v280_v32 }
 0x14c   :  { %v185_v33 = vpop.f32.mrf.mxu1 }
 0x14d   :  { %222 = vst.msk [vmem:[%s826_s5 + $0x30] sm:$0xff] %vm215_vm0, %v185_v33 }
 0x150   :  { %v304_v34 = vpop.f32.mrf.mxu3 }
 0x151   :  { %326 = vst.msk [vmem:[%s827_s6 + $0x68] sm:$0xff] %vm215_vm0, %v304_v34 }
 0x152   :  { %v283_v35 = vpop.f32.mrf.mxu2 }
 0x153   :  { %319 = vst.msk [vmem:[%s827_s6 + $0x30] sm:$0xff] %vm215_vm0, %v283_v35 }
 0x154   :  { %v188_v36 = vpop.f32.mrf.mxu1 }
 0x155   :  { %223 = vst.msk [vmem:[%s826_s5 + $0x38] sm:$0xff] %vm215_vm0, %v188_v36 }
 0x158   :  { %v307_v37 = vpop.f32.mrf.mxu3 }
 0x159   :  { %327 = vst.msk [vmem:[%s827_s6 + $0x70] sm:$0xff] %vm215_vm0, %v307_v37 }
 0x15a   :  { %v286_v38 = vpop.f32.mrf.mxu2 }
 0x15b   :  { %320 = vst.msk [vmem:[%s827_s6 + $0x38] sm:$0xff] %vm215_vm0, %v286_v38 }
 0x15c   :  { %v191_v39 = vpop.f32.mrf.mxu1 }
 0x15d   :  { %224 = vst.msk [vmem:[%s826_s5 + $0x40] sm:$0xff] %vm215_vm0, %v191_v39 }
 0x160   :  { %v310_v40 = vpop.f32.mrf.mxu3 }
 0x161   :  { %328 = vst.msk [vmem:[%s827_s6 + $0x78] sm:$0xff] %vm215_vm0, %v310_v40 }
 0x162   :  { %v289_v41 = vpop.f32.mrf.mxu2 }
 0x163   :  { %321 = vst.msk [vmem:[%s827_s6 + $0x40] sm:$0xff] %vm215_vm0, %v289_v41 }
 0x164   :  { %v194_v42 = vpop.f32.mrf.mxu1 }
 0x165   :  { %225 = vst.msk [vmem:[%s826_s5 + $0x48] sm:$0xff] %vm215_vm0, %v194_v42 }
 0x16a   :  { %v292_v43 = vpop.f32.mrf.mxu2 }
 0x16b   :  { %322 = vst.msk [vmem:[%s827_s6 + $0x48] sm:$0xff] %vm215_vm0, %v292_v43 }
 0x16c   :  { %v197_v44 = vpop.f32.mrf.mxu1 }
 0x16d   :  { %226 = vst.msk [vmem:[%s826_s5 + $0x50] sm:$0xff] %vm215_vm0, %v197_v44 }
 0x172   :  { %v295_v45 = vpop.f32.mrf.mxu2 }
 0x173   :  { %323 = vst.msk [vmem:[%s827_s6 + $0x50] sm:$0xff] %vm215_vm0, %v295_v45 }
 0x174   :  { %v200_v46 = vpop.f32.mrf.mxu1 }
 0x175   :  { %227 = vst.msk [vmem:[%s826_s5 + $0x58] sm:$0xff] %vm215_vm0, %v200_v46 }
 0x17a   :  { %v298_v47 = vpop.f32.mrf.mxu2 }
 0x17b   :  { %324 = vst.msk [vmem:[%s827_s6 + $0x58] sm:$0xff] %vm215_vm0, %v298_v47 }
 0x17c   :  { %430 = dma.done.wait [#allocation3], 2048  }
 0x17d   :  { %431 = vsyncadd [#allocation3], 4294965248 }
 0x17e   :  { %354 = vsyncpa [#allocation3], 1 }

</bundles_post_ra>
